<compile_context>
chip_gen: v7x
topology: tpu7x:2x2x1
jax: 0.10.0
libtpu: 0.0.40
codegen_flags: <defaults>
</compile_context>

<pallas_src>
import functools

import jax
import jax.numpy as jnp
from jax.experimental import pallas as pl
from jax.experimental.pallas import tpu as pltpu

BN_EPS = 1e-5
LANE = 128


def _round_up(x, m):
    return ((x + m - 1) // m) * m


def _vmem_cap_bytes():
    """Generation-dependent VMEM budget: physical VMEM minus headroom, capped."""
    phys = 64 << 20  # conservative default (v7x per-TC)
    try:
        info = pltpu.get_tpu_info()
        phys = int(getattr(info, "vmem_capacity_bytes", phys))
    except Exception:
        pass
    return int(max(min(phys - (24 << 20), 100 << 20), 32 << 20))


# ----------------------------------------------------------------------------
# Fused path (small batch): all layers in one pallas_call, batch VMEM-resident.
# ----------------------------------------------------------------------------
def _fused_mapper_kernel(num_layers, x_ref, *refs):
    """[Linear(no bias) -> BatchNorm1d(batch stats) -> ReLU] x num_layers.

    refs: per layer l: W_l (Din_p, Dout_p) bf16, gamma_l (1, Dout_p) f32,
    beta_l (1, Dout_p) f32; last ref is the output.
    """
    o_ref = refs[-1]
    n = x_ref.shape[0]
    inv_n = jnp.float32(1.0 / n)

    h_bf16 = x_ref[...]                                   # (N, D0_p) bf16
    h_f32 = None
    for l in range(num_layers):
        w_ref = refs[3 * l + 0]
        g_ref = refs[3 * l + 1]
        b_ref = refs[3 * l + 2]

        # Linear on the MXU, f32 accumulation (bias cancelled by BN).
        y = jnp.dot(h_bf16, w_ref[...], preferred_element_type=jnp.float32)

        # Batch statistics.
        mean = jnp.sum(y, axis=0, keepdims=True) * inv_n
        if l == 0:
            # Two-pass variance for raw embeddings (cancellation-safe).
            diff = y - mean
            var = jnp.sum(diff * diff, axis=0, keepdims=True) * inv_n
        else:
            # One-pass variance: fine in f32 for post-BN activations.
            var = jnp.maximum(
                jnp.sum(y * y, axis=0, keepdims=True) * inv_n - mean * mean, 0.0)

        # Fold BN into per-feature scale/shift -> (N, D) apply is 2 ops/elem.
        scale = g_ref[...] * jax.lax.rsqrt(var + BN_EPS)
        shift = b_ref[...] - mean * scale
        h_f32 = jnp.maximum(y * scale + shift, 0.0)
        if l < num_layers - 1:
            h_bf16 = h_f32.astype(jnp.bfloat16)           # next layer's MXU operand

    o_ref[...] = h_f32.astype(o_ref.dtype)


@functools.partial(jax.jit,
                   static_argnames=("decoder_input_dim", "vmem_limit", "out_dtype"))
def _forward_fused(embedding_vector, packed_params, *, decoder_input_dim,
                   vmem_limit, out_dtype):
    num_layers = len(packed_params) // 3
    n, d_in = embedding_vector.shape
    d_in_p = packed_params[0].shape[0]
    d_out_p = packed_params[3 * (num_layers - 1)].shape[1]

    x = embedding_vector.astype(jnp.bfloat16)
    if d_in_p != d_in:
        x = jnp.pad(x, ((0, 0), (0, d_in_p - d_in)))

    out_padded = pl.pallas_call(
        functools.partial(_fused_mapper_kernel, num_layers),
        out_shape=jax.ShapeDtypeStruct((n, d_out_p), out_dtype),
        in_specs=[pl.BlockSpec(memory_space=pltpu.VMEM)] * (1 + 3 * num_layers),
        out_specs=pl.BlockSpec(memory_space=pltpu.VMEM),
        compiler_params=pltpu.CompilerParams(vmem_limit_bytes=vmem_limit),
    )(x, *packed_params)

    return out_padded[:, :decoder_input_dim]


# ----------------------------------------------------------------------------
# Tiled path (large batch): two-pass BN, batch grid, weights resident in VMEM.
# ----------------------------------------------------------------------------
def _stats_kernel(n_valid, bt, x_ref, w_ref, sum_ref, sumsq_ref):
    """Pass 0: per-feature sum / sumsq of y = x @ W over batch tiles."""
    i = pl.program_id(0)

    @pl.when(i == 0)
    def _():
        sum_ref[...] = jnp.zeros_like(sum_ref)
        sumsq_ref[...] = jnp.zeros_like(sumsq_ref)

    y = jnp.dot(x_ref[...], w_ref[...], preferred_element_type=jnp.float32)
    row = i * bt + jax.lax.broadcasted_iota(jnp.int32, (bt, 1), 0)
    y = jnp.where(row < n_valid, y, 0.0)                  # mask padded batch rows
    sum_ref[...] += jnp.sum(y, axis=0, keepdims=True)
    sumsq_ref[...] += jnp.sum(y * y, axis=0, keepdims=True)


def _apply_and_next_stats_kernel(n_valid, bt, x_ref, w_ref, scale_ref, shift_ref,
                                 wn_ref, h_ref, sum_ref, sumsq_ref):
    """Apply layer l (recompute matmul, folded BN, ReLU) and accumulate the
    per-feature sum / sumsq of layer l+1's pre-BN output."""
    i = pl.program_id(0)

    @pl.when(i == 0)
    def _():
        sum_ref[...] = jnp.zeros_like(sum_ref)
        sumsq_ref[...] = jnp.zeros_like(sumsq_ref)

    y = jnp.dot(x_ref[...], w_ref[...], preferred_element_type=jnp.float32)
    h = jnp.maximum(y * scale_ref[...] + shift_ref[...], 0.0)
    h_bf16 = h.astype(jnp.bfloat16)
    h_ref[...] = h_bf16

    y_next = jnp.dot(h_bf16, wn_ref[...], preferred_element_type=jnp.float32)
    row = i * bt + jax.lax.broadcasted_iota(jnp.int32, (bt, 1), 0)
    y_next = jnp.where(row < n_valid, y_next, 0.0)        # mask padded batch rows
    sum_ref[...] += jnp.sum(y_next, axis=0, keepdims=True)
    sumsq_ref[...] += jnp.sum(y_next * y_next, axis=0, keepdims=True)


def _apply_last_kernel(x_ref, w_ref, scale_ref, shift_ref, o_ref):
    """Final layer apply: matmul + folded BN + ReLU, batch axis 'parallel'."""
    y = jnp.dot(x_ref[...], w_ref[...], preferred_element_type=jnp.float32)
    o_ref[...] = jnp.maximum(y * scale_ref[...] + shift_ref[...], 0.0).astype(o_ref.dtype)


@functools.partial(jax.jit, static_argnames=("decoder_input_dim", "batch_tile",
                                             "vmem_limit", "out_dtype"))
def _forward_tiled(embedding_vector, packed_params, *, decoder_input_dim,
                   batch_tile, vmem_limit, out_dtype):
    num_layers = len(packed_params) // 3
    n, d_in = embedding_vector.shape
    d_in_p = packed_params[0].shape[0]
    bt = batch_tile
    n_pad = _round_up(max(n, bt), bt)
    nt = n_pad // bt

    x = embedding_vector.astype(jnp.bfloat16)
    x = jnp.pad(x, ((0, n_pad - n), (0, d_in_p - d_in)))

    cp_acc = pltpu.CompilerParams(dimension_semantics=("arbitrary",),
                                  vmem_limit_bytes=vmem_limit)
    cp_par = pltpu.CompilerParams(dimension_semantics=("parallel",),
                                  vmem_limit_bytes=vmem_limit)

    inv_n = jnp.float32(1.0 / n)

    def stats_to_scale_shift(s, ss, gamma, beta):
        mean = s * inv_n
        var = jnp.maximum(ss * inv_n - mean * mean, 0.0)
        scale = gamma * jax.lax.rsqrt(var + BN_EPS)
        shift = beta - mean * scale
        return scale, shift

    # ---- Pass 0: statistics for layer 0.
    w0 = packed_params[0]
    d0 = w0.shape[1]
    s, ss = pl.pallas_call(
        functools.partial(_stats_kernel, n, bt),
        grid_spec=pltpu.PrefetchScalarGridSpec(
            num_scalar_prefetch=0, grid=(nt,),
            in_specs=[pl.BlockSpec((bt, d_in_p), lambda i: (i, 0)),
                      pl.BlockSpec((d_in_p, d0), lambda i: (0, 0))],
            out_specs=[pl.BlockSpec((1, d0), lambda i: (0, 0)),
                       pl.BlockSpec((1, d0), lambda i: (0, 0))]),
        out_shape=(jax.ShapeDtypeStruct((1, d0), jnp.float32),
                   jax.ShapeDtypeStruct((1, d0), jnp.float32)),
        compiler_params=cp_acc,
    )(x, w0)

    # ---- Passes 1..L: apply layer l (+ stats of layer l+1 when it exists).
    h = x
    out = None
    for l in range(num_layers):
        w = packed_params[3 * l + 0]
        gamma = packed_params[3 * l + 1]
        beta = packed_params[3 * l + 2]
        scale, shift = stats_to_scale_shift(s, ss, gamma, beta)
        d_in_l, d_out = w.shape

        if l < num_layers - 1:
            w_next = packed_params[3 * (l + 1)]
            d_next = w_next.shape[1]
            h, s, ss = pl.pallas_call(
                functools.partial(_apply_and_next_stats_kernel, n, bt),
                grid_spec=pltpu.PrefetchScalarGridSpec(
                    num_scalar_prefetch=0, grid=(nt,),
                    in_specs=[pl.BlockSpec((bt, d_in_l), lambda i: (i, 0)),
                              pl.BlockSpec((d_in_l, d_out), lambda i: (0, 0)),
                              pl.BlockSpec((1, d_out), lambda i: (0, 0)),
                              pl.BlockSpec((1, d_out), lambda i: (0, 0)),
                              pl.BlockSpec((d_out, d_next), lambda i: (0, 0))],
                    out_specs=[pl.BlockSpec((bt, d_out), lambda i: (i, 0)),
                               pl.BlockSpec((1, d_next), lambda i: (0, 0)),
                               pl.BlockSpec((1, d_next), lambda i: (0, 0))]),
                out_shape=(jax.ShapeDtypeStruct((n_pad, d_out), jnp.bfloat16),
                           jax.ShapeDtypeStruct((1, d_next), jnp.float32),
                           jax.ShapeDtypeStruct((1, d_next), jnp.float32)),
                compiler_params=cp_acc,
            )(h, w, scale, shift, w_next)
        else:
            out = pl.pallas_call(
                _apply_last_kernel,
                grid_spec=pltpu.PrefetchScalarGridSpec(
                    num_scalar_prefetch=0, grid=(nt,),
                    in_specs=[pl.BlockSpec((bt, d_in_l), lambda i: (i, 0)),
                              pl.BlockSpec((d_in_l, d_out), lambda i: (0, 0)),
                              pl.BlockSpec((1, d_out), lambda i: (0, 0)),
                              pl.BlockSpec((1, d_out), lambda i: (0, 0))],
                    out_specs=pl.BlockSpec((bt, d_out), lambda i: (i, 0))),
                out_shape=jax.ShapeDtypeStruct((n_pad, d_out), out_dtype),
                compiler_params=cp_par,
            )(h, w, scale, shift)

    return out[:n, :decoder_input_dim]


# ----------------------------------------------------------------------------
# Parameter handling & public entry point.
# ----------------------------------------------------------------------------
def init_multilingual_mapper_params(key, embedding_vector_dim, decoder_input_dim,
                                    mapper_numlayer):
    """PyTorch-style parameters (f32, logical shapes).

    Per layer: W (in_features, out_features) pre-transposed, b (1, out),
    gamma (1, out) = 1, beta (1, out) = 0.
    """
    params = []
    dims_in = [embedding_vector_dim] * mapper_numlayer
    dims_out = [embedding_vector_dim] * (mapper_numlayer - 1) + [decoder_input_dim]
    for d_in, d_out in zip(dims_in, dims_out):
        key, kw, kb = jax.random.split(key, 3)
        bound = 1.0 / (d_in ** 0.5)
        w = jax.random.uniform(kw, (d_in, d_out), jnp.float32, -bound, bound)
        b = jax.random.uniform(kb, (1, d_out), jnp.float32, -bound, bound)
        gamma = jnp.ones((1, d_out), jnp.float32)
        beta = jnp.zeros((1, d_out), jnp.float32)
        params.append((w, b, gamma, beta))
    return params


def pack_mapper_params(params):
    """Kernel-side parameters: bias dropped (cancelled by BN), weights cast to
    bf16, feature dims zero-padded to multiples of 128 (lane-dense)."""
    packed = []
    for (w, _b, gamma, beta) in params:
        d_in, d_out = w.shape
        d_in_p = _round_up(d_in, LANE)
        d_out_p = _round_up(d_out, LANE)
        w_p = jnp.zeros((d_in_p, d_out_p), jnp.bfloat16)
        w_p = w_p.at[:d_in, :d_out].set(w.astype(jnp.bfloat16))
        g_p = jnp.ones((1, d_out_p), jnp.float32).at[:, :d_out].set(gamma)
        b_p = jnp.zeros((1, d_out_p), jnp.float32).at[:, :d_out].set(beta)
        packed.extend([w_p, g_p, b_p])
    return tuple(packed)


def multilingual_mapper_forward(embedding_vector, packed_params, decoder_input_dim,
                                *, batch_tile=None, out_dtype=jnp.float32):
    """Forward pass. Small batches: one fused pallas_call with the whole batch
    resident in VMEM. Large batches (or `batch_tile` forced): batch-tiled
    two-pass-BN pipeline."""
    num_layers = len(packed_params) // 3
    n, _ = embedding_vector.shape
    d_in_p = packed_params[0].shape[0]
    d_out_p = packed_params[3 * (num_layers - 1)].shape[1]
    cap = _vmem_cap_bytes()

    # Fused-path footprint estimate: params resident once (no double-buffering
    # in a gridless call), IO once, ~5 f32 (N, Dmax)-sized live temporaries.
    max_dp = max(max(int(p.shape[-1]) for p in packed_params), d_in_p)
    par_bytes = sum(int(p.size) * p.dtype.itemsize for p in packed_params)
    io_bytes = n * d_in_p * 2 + n * d_out_p * jnp.dtype(out_dtype).itemsize
    act_bytes = 5 * n * max_dp * 4
    fused_bytes = act_bytes + par_bytes + io_bytes + (2 << 20)

    if batch_tile is None and fused_bytes <= cap:
        vmem_limit = int(min(max(fused_bytes, 8 << 20), cap))
        return _forward_fused(embedding_vector, packed_params,
                              decoder_input_dim=int(decoder_input_dim),
                              vmem_limit=vmem_limit, out_dtype=out_dtype)

    bt = 512 if batch_tile is None else int(batch_tile)
    bt = min(bt, _round_up(n, 8))
    bt = max(8, _round_up(bt, 8))
    return _forward_tiled(embedding_vector, packed_params,
                          decoder_input_dim=int(decoder_input_dim),
                          batch_tile=bt, vmem_limit=cap, out_dtype=out_dtype)


# ----------------------------------------------------------------------------
# Pure-JAX reference (PyTorch training-mode semantics) for correctness checks.
# ----------------------------------------------------------------------------
def _reference_forward(x, params, *, bf16_matmul=True):
    """Linear WITH bias -> BatchNorm1d(batch stats) -> ReLU, per layer.
    With bf16_matmul=True the matmul operands are quantized like the kernel's,
    so the comparison is tight (and demonstrates bias cancellation by BN)."""
    h = x.astype(jnp.float32)
    for (w, b, gamma, beta) in params:
        if bf16_matmul:
            y = jnp.dot(h.astype(jnp.bfloat16), w.astype(jnp.bfloat16),
                        preferred_element_type=jnp.float32) + b
        else:
            y = h @ w + b
        mean = jnp.mean(y, axis=0, keepdims=True)
        var = jnp.mean((y - mean) ** 2, axis=0, keepdims=True)
        y = (y - mean) * jax.lax.rsqrt(var + BN_EPS) * gamma + beta
        h = jnp.maximum(y, 0.0)
    return h


if __name__ == "__main__":
    # Small shapes consistent with the module (emb_dim -> ... -> decoder_dim).
    # emb_dim=192 exercises input-feature padding (192 -> 256 lanes);
    # decoder_input_dim=64 exercises the lane-dense (64 -> 128) output padding.
    embedding_vector_dim = 192
    decoder_input_dim = 64
    mapper_numlayer = 3

    key = jax.random.PRNGKey(0)
    key, k1, k2 = jax.random.split(key, 3)
    params = init_multilingual_mapper_params(
        key, embedding_vector_dim, decoder_input_dim, mapper_numlayer)
    packed = pack_mapper_params(params)

    # --- Path 1: small batch -> single fused call, whole batch VMEM-resident.
    x_small = jax.random.normal(k1, (32, embedding_vector_dim), jnp.float32)
    out_small = jax.block_until_ready(
        multilingual_mapper_forward(x_small, packed, decoder_input_dim))
    assert out_small.shape == (32, decoder_input_dim)
    ref_tight = _reference_forward(x_small, params, bf16_matmul=True)
    assert jnp.allclose(out_small, ref_tight, atol=5e-3, rtol=5e-3), \
        "fused path: mismatch vs bf16-matmul reference"
    ref_f32 = _reference_forward(x_small, params, bf16_matmul=False)
    assert jnp.allclose(out_small, ref_f32, atol=1e-1, rtol=1e-1), \
        "fused path: mismatch vs f32 reference"

    # --- Path 2: batch-tiled two-pass-BN pipeline (forced small tile; 72 rows
    # with tile 16 also exercises the padded-row masking in the statistics).
    x_big = jax.random.normal(k2, (72, embedding_vector_dim), jnp.float32)
    out_big = jax.block_until_ready(
        multilingual_mapper_forward(x_big, packed, decoder_input_dim, batch_tile=16))
    assert out_big.shape == (72, decoder_input_dim)
    ref_big = _reference_forward(x_big, params, bf16_matmul=True)
    assert jnp.allclose(out_big, ref_big, atol=5e-3, rtol=5e-3), \
        "tiled path: mismatch vs bf16-matmul reference"

    print("KERNEL_OK")
</pallas_src>

<mosaic_0001>
module attributes {stable_mosaic.version = 11 : i64} {
  func.func @_fused_mapper_kernel(%arg0: memref<32x256xbf16, #tpu.memory_space<vmem>>, %arg1: memref<256x256xbf16, #tpu.memory_space<vmem>>, %arg2: memref<1x256xf32, #tpu.memory_space<vmem>>, %arg3: memref<1x256xf32, #tpu.memory_space<vmem>>, %arg4: memref<256x256xbf16, #tpu.memory_space<vmem>>, %arg5: memref<1x256xf32, #tpu.memory_space<vmem>>, %arg6: memref<1x256xf32, #tpu.memory_space<vmem>>, %arg7: memref<256x128xbf16, #tpu.memory_space<vmem>>, %arg8: memref<1x128xf32, #tpu.memory_space<vmem>>, %arg9: memref<1x128xf32, #tpu.memory_space<vmem>>, %arg10: memref<32x128xf32, #tpu.memory_space<vmem>>) attributes {dimension_semantics = [], scalar_prefetch = 0 : i64, scratch_operands = 0 : i64, tpu.core_type = #tpu.core_type<tc>} {
    %c0 = arith.constant 0 : index
    %c0_0 = arith.constant 0 : index
    %0 = vector.load %arg0[%c0, %c0_0] : memref<32x256xbf16, #tpu.memory_space<vmem>>, vector<32x256xbf16>
    %c0_1 = arith.constant 0 : index
    %c0_2 = arith.constant 0 : index
    %1 = vector.load %arg1[%c0_1, %c0_2] : memref<256x256xbf16, #tpu.memory_space<vmem>>, vector<256x256xbf16>
    %cst = arith.constant dense<0.000000e+00> : vector<32x256xf32>
    %2 = tpu.matmul %0, %1, %cst {dimension_numbers = #tpu.dot_dimension_numbers<[1], [0], [0], [1], [0, 0, 1, 1], [], []>} : vector<32x256xbf16>, vector<256x256xbf16>, vector<32x256xf32> -> vector<32x256xf32>
    %cst_3 = arith.constant dense<0.000000e+00> : vector<256xf32>
    %3 = vector.multi_reduction <add>, %2, %cst_3 [0] : vector<32x256xf32> to vector<256xf32>
    %4 = vector.shape_cast %3 : vector<256xf32> to vector<1x256xf32>
    %cst_4 = arith.constant 3.125000e-02 : f32
    %5 = vector.broadcast %cst_4 : f32 to vector<1x256xf32>
    %6 = arith.mulf %4, %5 : vector<1x256xf32>
    %7 = vector.broadcast %6 : vector<1x256xf32> to vector<32x256xf32>
    %8 = arith.subf %2, %7 : vector<32x256xf32>
    %9 = arith.mulf %8, %8 : vector<32x256xf32>
    %cst_5 = arith.constant dense<0.000000e+00> : vector<256xf32>
    %10 = vector.multi_reduction <add>, %9, %cst_5 [0] : vector<32x256xf32> to vector<256xf32>
    %11 = vector.shape_cast %10 : vector<256xf32> to vector<1x256xf32>
    %cst_6 = arith.constant 3.125000e-02 : f32
    %12 = vector.broadcast %cst_6 : f32 to vector<1x256xf32>
    %13 = arith.mulf %11, %12 : vector<1x256xf32>
    %c0_7 = arith.constant 0 : index
    %c0_8 = arith.constant 0 : index
    %14 = vector.load %arg2[%c0_7, %c0_8] : memref<1x256xf32, #tpu.memory_space<vmem>>, vector<1x256xf32>
    %cst_9 = arith.constant 9.99999974E-6 : f32
    %15 = vector.broadcast %cst_9 : f32 to vector<1x256xf32>
    %16 = arith.addf %13, %15 : vector<1x256xf32>
    %17 = math.rsqrt %16 : vector<1x256xf32>
    %18 = arith.mulf %14, %17 : vector<1x256xf32>
    %c0_10 = arith.constant 0 : index
    %c0_11 = arith.constant 0 : index
    %19 = vector.load %arg3[%c0_10, %c0_11] : memref<1x256xf32, #tpu.memory_space<vmem>>, vector<1x256xf32>
    %20 = arith.mulf %6, %18 : vector<1x256xf32>
    %21 = arith.subf %19, %20 : vector<1x256xf32>
    %22 = vector.broadcast %18 : vector<1x256xf32> to vector<32x256xf32>
    %23 = arith.mulf %2, %22 : vector<32x256xf32>
    %24 = vector.broadcast %21 : vector<1x256xf32> to vector<32x256xf32>
    %25 = arith.addf %23, %24 : vector<32x256xf32>
    %cst_12 = arith.constant 0.000000e+00 : f32
    %26 = vector.broadcast %cst_12 : f32 to vector<32x256xf32>
    %27 = arith.maximumf %25, %26 : vector<32x256xf32>
    %28 = arith.truncf %27 : vector<32x256xf32> to vector<32x256xbf16>
    %c0_13 = arith.constant 0 : index
    %c0_14 = arith.constant 0 : index
    %29 = vector.load %arg4[%c0_13, %c0_14] : memref<256x256xbf16, #tpu.memory_space<vmem>>, vector<256x256xbf16>
    %cst_15 = arith.constant dense<0.000000e+00> : vector<32x256xf32>
    %30 = tpu.matmul %28, %29, %cst_15 {dimension_numbers = #tpu.dot_dimension_numbers<[1], [0], [0], [1], [0, 0, 1, 1], [], []>} : vector<32x256xbf16>, vector<256x256xbf16>, vector<32x256xf32> -> vector<32x256xf32>
    %cst_16 = arith.constant dense<0.000000e+00> : vector<256xf32>
    %31 = vector.multi_reduction <add>, %30, %cst_16 [0] : vector<32x256xf32> to vector<256xf32>
    %32 = vector.shape_cast %31 : vector<256xf32> to vector<1x256xf32>
    %cst_17 = arith.constant 3.125000e-02 : f32
    %33 = vector.broadcast %cst_17 : f32 to vector<1x256xf32>
    %34 = arith.mulf %32, %33 : vector<1x256xf32>
    %35 = arith.mulf %30, %30 : vector<32x256xf32>
    %cst_18 = arith.constant dense<0.000000e+00> : vector<256xf32>
    %36 = vector.multi_reduction <add>, %35, %cst_18 [0] : vector<32x256xf32> to vector<256xf32>
    %37 = vector.shape_cast %36 : vector<256xf32> to vector<1x256xf32>
    %cst_19 = arith.constant 3.125000e-02 : f32
    %38 = vector.broadcast %cst_19 : f32 to vector<1x256xf32>
    %39 = arith.mulf %37, %38 : vector<1x256xf32>
    %40 = arith.mulf %34, %34 : vector<1x256xf32>
    %41 = arith.subf %39, %40 : vector<1x256xf32>
    %cst_20 = arith.constant 0.000000e+00 : f32
    %42 = vector.broadcast %cst_20 : f32 to vector<1x256xf32>
    %43 = arith.maximumf %41, %42 : vector<1x256xf32>
    %c0_21 = arith.constant 0 : index
    %c0_22 = arith.constant 0 : index
    %44 = vector.load %arg5[%c0_21, %c0_22] : memref<1x256xf32, #tpu.memory_space<vmem>>, vector<1x256xf32>
    %cst_23 = arith.constant 9.99999974E-6 : f32
    %45 = vector.broadcast %cst_23 : f32 to vector<1x256xf32>
    %46 = arith.addf %43, %45 : vector<1x256xf32>
    %47 = math.rsqrt %46 : vector<1x256xf32>
    %48 = arith.mulf %44, %47 : vector<1x256xf32>
    %c0_24 = arith.constant 0 : index
    %c0_25 = arith.constant 0 : index
    %49 = vector.load %arg6[%c0_24, %c0_25] : memref<1x256xf32, #tpu.memory_space<vmem>>, vector<1x256xf32>
    %50 = arith.mulf %34, %48 : vector<1x256xf32>
    %51 = arith.subf %49, %50 : vector<1x256xf32>
    %52 = vector.broadcast %48 : vector<1x256xf32> to vector<32x256xf32>
    %53 = arith.mulf %30, %52 : vector<32x256xf32>
    %54 = vector.broadcast %51 : vector<1x256xf32> to vector<32x256xf32>
    %55 = arith.addf %53, %54 : vector<32x256xf32>
    %cst_26 = arith.constant 0.000000e+00 : f32
    %56 = vector.broadcast %cst_26 : f32 to vector<32x256xf32>
    %57 = arith.maximumf %55, %56 : vector<32x256xf32>
    %58 = arith.truncf %57 : vector<32x256xf32> to vector<32x256xbf16>
    %c0_27 = arith.constant 0 : index
    %c0_28 = arith.constant 0 : index
    %59 = vector.load %arg7[%c0_27, %c0_28] : memref<256x128xbf16, #tpu.memory_space<vmem>>, vector<256x128xbf16>
    %cst_29 = arith.constant dense<0.000000e+00> : vector<32x128xf32>
    %60 = tpu.matmul %58, %59, %cst_29 {dimension_numbers = #tpu.dot_dimension_numbers<[1], [0], [0], [1], [0, 0, 1, 1], [], []>} : vector<32x256xbf16>, vector<256x128xbf16>, vector<32x128xf32> -> vector<32x128xf32>
    %cst_30 = arith.constant dense<0.000000e+00> : vector<128xf32>
    %61 = vector.multi_reduction <add>, %60, %cst_30 [0] : vector<32x128xf32> to vector<128xf32>
    %62 = vector.shape_cast %61 : vector<128xf32> to vector<1x128xf32>
    %cst_31 = arith.constant 3.125000e-02 : f32
    %63 = vector.broadcast %cst_31 : f32 to vector<1x128xf32>
    %64 = arith.mulf %62, %63 : vector<1x128xf32>
    %65 = arith.mulf %60, %60 : vector<32x128xf32>
    %cst_32 = arith.constant dense<0.000000e+00> : vector<128xf32>
    %66 = vector.multi_reduction <add>, %65, %cst_32 [0] : vector<32x128xf32> to vector<128xf32>
    %67 = vector.shape_cast %66 : vector<128xf32> to vector<1x128xf32>
    %cst_33 = arith.constant 3.125000e-02 : f32
    %68 = vector.broadcast %cst_33 : f32 to vector<1x128xf32>
    %69 = arith.mulf %67, %68 : vector<1x128xf32>
    %70 = arith.mulf %64, %64 : vector<1x128xf32>
    %71 = arith.subf %69, %70 : vector<1x128xf32>
    %cst_34 = arith.constant 0.000000e+00 : f32
    %72 = vector.broadcast %cst_34 : f32 to vector<1x128xf32>
    %73 = arith.maximumf %71, %72 : vector<1x128xf32>
    %c0_35 = arith.constant 0 : index
    %c0_36 = arith.constant 0 : index
    %74 = vector.load %arg8[%c0_35, %c0_36] : memref<1x128xf32, #tpu.memory_space<vmem>>, vector<1x128xf32>
    %cst_37 = arith.constant 9.99999974E-6 : f32
    %75 = vector.broadcast %cst_37 : f32 to vector<1x128xf32>
    %76 = arith.addf %73, %75 : vector<1x128xf32>
    %77 = math.rsqrt %76 : vector<1x128xf32>
    %78 = arith.mulf %74, %77 : vector<1x128xf32>
    %c0_38 = arith.constant 0 : index
    %c0_39 = arith.constant 0 : index
    %79 = vector.load %arg9[%c0_38, %c0_39] : memref<1x128xf32, #tpu.memory_space<vmem>>, vector<1x128xf32>
    %80 = arith.mulf %64, %78 : vector<1x128xf32>
    %81 = arith.subf %79, %80 : vector<1x128xf32>
    %82 = vector.broadcast %78 : vector<1x128xf32> to vector<32x128xf32>
    %83 = arith.mulf %60, %82 : vector<32x128xf32>
    %84 = vector.broadcast %81 : vector<1x128xf32> to vector<32x128xf32>
    %85 = arith.addf %83, %84 : vector<32x128xf32>
    %cst_40 = arith.constant 0.000000e+00 : f32
    %86 = vector.broadcast %cst_40 : f32 to vector<32x128xf32>
    %87 = arith.maximumf %85, %86 : vector<32x128xf32>
    %c0_41 = arith.constant 0 : index
    %c0_42 = arith.constant 0 : index
    %88 = vector.load %arg10[%c0_41, %c0_42] : memref<32x128xf32, #tpu.memory_space<vmem>>, vector<32x128xf32>
    tpu.vector_store %arg10[%c0_41, %c0_42], %87 {strides = array<i32>} : memref<32x128xf32, #tpu.memory_space<vmem>>, vector<32x128xf32>,
    return
  }
}

</mosaic_0001>

<bundles_post_ra>
// kernel: _forward_fused.1
= control target key start
LH: loop header
LB: loop body
LE: loop exit
PB: predicated region body
PF: predicated region fallthrough
CT: control target
= control target key end

     0   :  { %15 = vsyncpa [#allocation3], 0  ;;  %s1762_s0 = inlined_call_operand.vmem [shape: bf16[32,256], index: 0, kind: input, shape index: {}]   ;;  %s1763_s1 = inlined_call_operand.hbm [shape: bf16[256,256], index: 1, kind: input, shape index: {}]   ;;  %s1764_s2 = inlined_call_operand.vmem [shape: f32[1,256], index: 2, kind: input, shape index: {}]   ;;  %s1765_s3 = inlined_call_operand.vmem [shape: f32[1,256], index: 3, kind: input, shape index: {}]   ;;  %s1766_s4 = inlined_call_operand.hbm [shape: bf16[256,256], index: 4, kind: input, shape index: {}]   ;;  %s1767_s5 = inlined_call_operand.vmem [shape: f32[1,256], index: 5, kind: input, shape index: {}]   ;;  %s1768_s6 = inlined_call_operand.vmem [shape: f32[1,256], index: 6, kind: input, shape index: {}]   ;;  %s1769_s7 = inlined_call_operand.vmem [shape: bf16[256,128], index: 7, kind: input, shape index: {}]   ;;  %s1770_s8 = inlined_call_operand.vmem [shape: f32[1,128], index: 8, kind: input, shape index: {}]   ;;  %s1771_s9 = inlined_call_operand.vmem [shape: f32[1,128], index: 9, kind: input, shape index: {}]   ;;  %s1772_s10 = inlined_call_operand.hbm [shape: f32[32,128], index: 10, kind: output, shape index: {}]  }
   0x1   :  { %16 = vsyncpa [#allocation6], 0 }
   0x2   :  { %17 = vsyncpa [#allocation4], 0  ;;  %s1472_s13 = smov [#allocation2]   ;;  %s1400_s17 = scalar_lea.hbm %s1763_s1, 4096 }
   0x3   :  { %s25_s14 = sshll.u32 %s1472_s13, 4  ;;  %p1401_p0 = scmp.ne.s32.totalorder %s1763_s1, %s1400_s17  ;;  %s26_s14 = int_to_ptr.vmem [resolvable:$true] %s25_s14 }
   0x4   :  { %p1404_p1 = scmp.lt.u32.totalorder %s1400_s17, %s1763_s1 }
   0x6   :  { %p1406_p2 = pnand %p1404_p1, %p1401_p0 }
   0x8   :  { %1409 = shalt.err (!%p1406_p2)
}
   0x9   :  { %s1410_s22 = scalar_lea.vmem %s26_s14, 4096  ;;  %p1415_p4 = scmp.lt.s32.totalorder %s26_s14, %s26_s14 }
   0xa   :  { %p1411_p3 = scmp.ne.s32.totalorder %s26_s14, %s1410_s22  ;;  %p1416_p5 = scmp.lt.s32.totalorder %s1410_s22, %s1410_s22 }
   0xc   :  { %p1417_p6 = por %p1416_p5, %p1415_p4 }
   0xe   :  { %p1418_p7 = pnand %p1417_p6, %p1411_p3 }
  0x10   :  { %1421 = shalt.err (!%p1418_p7)
}
  0x11   :  { %s1473_s23 = smov 128   ;;  %s1474_s24 = smov 8  }
  0x12   :  { %31 = dma.hbm_to_vmem [thread:$0]  %s1763_s1, 4096, %s26_s14, [#allocation3], %s1473_s23, %s1473_s23, %s1474_s24  }
  0x13   :  { %s1475_s27 = smov [#allocation5]   ;;  %s1422_s11 = scalar_lea.hbm %s1766_s4, 4096 }
  0x14   :  { %s41_s28 = sshll.u32 %s1475_s27, 4  ;;  %p1423_p8 = scmp.ne.s32.totalorder %s1766_s4, %s1422_s11  ;;  %s42_s28 = int_to_ptr.vmem [resolvable:$true] %s41_s28 }
  0x15   :  { %p1426_p9 = scmp.lt.u32.totalorder %s1422_s11, %s1766_s4 }
  0x17   :  { %p1428_p10 = pnand %p1426_p9, %p1423_p8 }
  0x19   :  { %1431 = shalt.err (!%p1428_p10)
}
  0x1a   :  { %s1432_s17 = scalar_lea.vmem %s42_s28, 4096  ;;  %p1437_p12 = scmp.lt.s32.totalorder %s42_s28, %s42_s28 }
  0x1b   :  { %p1433_p11 = scmp.ne.s32.totalorder %s42_s28, %s1432_s17  ;;  %p1438_p13 = scmp.lt.s32.totalorder %s1432_s17, %s1432_s17 }
  0x1d   :  { %p1439_p0 = por %p1438_p13, %p1437_p12 }
  0x1f   :  { %p1440_p1 = pnand %p1439_p0, %p1433_p11 }
  0x21   :  { %1443 = shalt.err (!%p1440_p1)
}
  0x22   :  { %47 = dma.hbm_to_vmem [thread:$0]  %s1766_s4, 4096, %s42_s28, [#allocation6], %s1473_s23, %s1473_s23, %s1474_s24  }
  0x23   :  { %1466 = dma.done.wait [#allocation3], 4096  }
  0x24   :  { %1467 = vsyncadd [#allocation3], 4294963200 }
  0x25   :  { %1468 = dma.done.wait [#allocation6], 4096  }
  0x26   :  { %1469 = vsyncadd [#allocation6], 4294963200  ;;  %v1272_v0 = vld [vmem:[#allocation2 + $0x4] ss:$8 sps:$4 sm:$0xff]   ;;  %v1274_v1 = vld [vmem:[#allocation2] ss:$8 sps:$4 sm:$0xff]  }
  0x27   :  { %281 = vmatprep.subr.bf16.mxu0 %v1272_v0  ;;  %v1275_v2 = vld [vmem:[#allocation2 + $0x14] ss:$8 sps:$4 sm:$0xff]   ;;  %v1277_v3 = vld [vmem:[#allocation2 + $0x10] ss:$8 sps:$4 sm:$0xff]   ;;  %v1278_v4 = vld [vmem:[#allocation2 + $0x24] ss:$8 sps:$4 sm:$0xff]  }
  0x28   :  { %282 = vmatpush1.bf16.msra.mxu0 %v1274_v1  ;;  %v1280_v5 = vld [vmem:[#allocation2 + $0x20] ss:$8 sps:$4 sm:$0xff]   ;;  %v1281_v6 = vld [vmem:[#allocation2 + $0x34] ss:$8 sps:$4 sm:$0xff]   ;;  %v1283_v7 = vld [vmem:[#allocation2 + $0x30] ss:$8 sps:$4 sm:$0xff]  }
  0x29   :  { %283 = vmatprep.subr.bf16.mxu0 %v1275_v2  ;;  %v1284_v8 = vld [vmem:[#allocation2 + $0x44] ss:$8 sps:$4 sm:$0xff]   ;;  %v1286_v9 = vld [vmem:[#allocation2 + $0x40] ss:$8 sps:$4 sm:$0xff]   ;;  %v1287_v10 = vld [vmem:[#allocation2 + $0x54] ss:$8 sps:$4 sm:$0xff]  }
  0x2a   :  { %v1289_v11 = vld [vmem:[#allocation2 + $0x50] ss:$8 sps:$4 sm:$0xff]   ;;  %v1290_v12 = vld [vmem:[#allocation2 + $0x64] ss:$8 sps:$4 sm:$0xff]   ;;  %v1292_v14 = vld [vmem:[#allocation2 + $0x60] ss:$8 sps:$4 sm:$0xff]  }
  0x2b   :  { %v1322_v13 = vld [vmem:[%s1762_s0 + $0x4] ss:$8 sps:$4 sm:$0xff]   ;;  %v1293_v15 = vld [vmem:[#allocation2 + $0x74] ss:$8 sps:$4 sm:$0xff]   ;;  %v1295_v16 = vld [vmem:[#allocation2 + $0x70] ss:$8 sps:$4 sm:$0xff]  }
  0x2c   :  { %284 = vmatpush1.bf16.msra.mxu0 %v1277_v3  ;;  %313 = vmatprep.mubr.bf16.mxu0 %v1322_v13  ;;  %v1296_v17 = vld [vmem:[#allocation2 + $0x84] ss:$8 sps:$4 sm:$0xff]   ;;  %v1298_v18 = vld [vmem:[#allocation2 + $0x80] ss:$8 sps:$4 sm:$0xff]   ;;  %v1299_v19 = vld [vmem:[#allocation2 + $0x94] ss:$8 sps:$4 sm:$0xff]  }
  0x2d   :  { %285 = vmatprep.subr.bf16.mxu0 %v1278_v4  ;;  %v1301_v20 = vld [vmem:[#allocation2 + $0x90] ss:$8 sps:$4 sm:$0xff]   ;;  %v1302_v21 = vld [vmem:[#allocation2 + $0xa4] ss:$8 sps:$4 sm:$0xff]   ;;  %v1304_v22 = vld [vmem:[#allocation2 + $0xa0] ss:$8 sps:$4 sm:$0xff]  }
  0x2e   :  { %v1305_v23 = vld [vmem:[#allocation2 + $0xb4] ss:$8 sps:$4 sm:$0xff]   ;;  %v1307_v24 = vld [vmem:[#allocation2 + $0xb0] ss:$8 sps:$4 sm:$0xff]   ;;  %v1308_v25 = vld [vmem:[#allocation2 + $0xc4] ss:$8 sps:$4 sm:$0xff]  }
  0x2f   :  { %v1310_v26 = vld [vmem:[#allocation2 + $0xc0] ss:$8 sps:$4 sm:$0xff]   ;;  %v1311_v27 = vld [vmem:[#allocation2 + $0xd4] ss:$8 sps:$4 sm:$0xff]   ;;  %v1313_v28 = vld [vmem:[#allocation2 + $0xd0] ss:$8 sps:$4 sm:$0xff]  }
  0x30   :  { %286 = vmatpush1.bf16.msra.mxu0 %v1280_v5  ;;  %v1314_v29 = vld [vmem:[#allocation2 + $0xe4] ss:$8 sps:$4 sm:$0xff]   ;;  %v1316_v30 = vld [vmem:[#allocation2 + $0xe0] ss:$8 sps:$4 sm:$0xff]   ;;  %v1317_v31 = vld [vmem:[#allocation2 + $0xf4] ss:$8 sps:$4 sm:$0xff]  }
  0x31   :  { %287 = vmatprep.subr.bf16.mxu0 %v1281_v6  ;;  %v1319_v32 = vld [vmem:[#allocation2 + $0xf0] ss:$8 sps:$4 sm:$0xff]   ;;  %v1320_v33 = vld [vmem:[%s1762_s0] ss:$8 sps:$4 sm:$0xff]   ;;  %v1323_v34 = vld [vmem:[%s1762_s0 + $0x14] ss:$8 sps:$4 sm:$0xff]  }
  0x32   :  { %v1325_v35 = vld [vmem:[%s1762_s0 + $0x10] ss:$8 sps:$4 sm:$0xff]   ;;  %v1326_v36 = vld [vmem:[#allocation5 + $0x4] ss:$8 sps:$4 sm:$0xff]   ;;  %v1328_v37 = vld [vmem:[#allocation5] ss:$8 sps:$4 sm:$0xff]  }
  0x33   :  { %678 = vmatprep.subr.bf16.mxu1 %v1326_v36  ;;  %v1329_v38 = vld [vmem:[#allocation5 + $0x14] ss:$8 sps:$4 sm:$0xff]   ;;  %v1331_v39 = vld [vmem:[#allocation5 + $0x10] ss:$8 sps:$4 sm:$0xff]   ;;  %v1332_v40 = vld [vmem:[#allocation5 + $0x24] ss:$8 sps:$4 sm:$0xff]  }
  0x34   :  { %288 = vmatpush1.bf16.msra.mxu0 %v1283_v7  ;;  %679 = vmatpush1.bf16.msra.mxu1 %v1328_v37  ;;  %v1334_v41 = vld [vmem:[#allocation5 + $0x20] ss:$8 sps:$4 sm:$0xff]   ;;  %v1335_v42 = vld [vmem:[#allocation5 + $0x34] ss:$8 sps:$4 sm:$0xff]   ;;  %v1337_v43 = vld [vmem:[#allocation5 + $0x30] ss:$8 sps:$4 sm:$0xff]  }
  0x35   :  { %289 = vmatprep.subr.bf16.mxu0 %v1284_v8  ;;  %680 = vmatprep.subr.bf16.mxu1 %v1329_v38  ;;  %v1338_v44 = vld [vmem:[#allocation5 + $0x44] ss:$8 sps:$4 sm:$0xff]   ;;  %v1340_v45 = vld [vmem:[#allocation5 + $0x40] ss:$8 sps:$4 sm:$0xff]   ;;  %v1341_v46 = vld [vmem:[#allocation5 + $0x54] ss:$8 sps:$4 sm:$0xff]  }
  0x36   :  { %v1343_v47 = vld [vmem:[#allocation5 + $0x50] ss:$8 sps:$4 sm:$0xff]   ;;  %v1344_v48 = vld [vmem:[#allocation5 + $0x64] ss:$8 sps:$4 sm:$0xff]   ;;  %v1346_v49 = vld [vmem:[#allocation5 + $0x60] ss:$8 sps:$4 sm:$0xff]  }
  0x37   :  { %v1347_v50 = vld [vmem:[#allocation5 + $0x74] ss:$8 sps:$4 sm:$0xff]   ;;  %v1349_v51 = vld [vmem:[#allocation5 + $0x70] ss:$8 sps:$4 sm:$0xff]   ;;  %v1350_v52 = vld [vmem:[#allocation5 + $0x84] ss:$8 sps:$4 sm:$0xff]  }
  0x38   :  { %290 = vmatpush1.bf16.msra.mxu0 %v1286_v9  ;;  %681 = vmatpush1.bf16.msra.mxu1 %v1331_v39  ;;  %v1352_v53 = vld [vmem:[#allocation5 + $0x80] ss:$8 sps:$4 sm:$0xff]   ;;  %v1353_v54 = vld [vmem:[#allocation5 + $0x94] ss:$8 sps:$4 sm:$0xff]   ;;  %v1355_v55 = vld [vmem:[#allocation5 + $0x90] ss:$8 sps:$4 sm:$0xff]  }
  0x39   :  { %291 = vmatprep.subr.bf16.mxu0 %v1287_v10  ;;  %682 = vmatprep.subr.bf16.mxu1 %v1332_v40  ;;  %v1356_v56 = vld [vmem:[#allocation5 + $0xa4] ss:$8 sps:$4 sm:$0xff]   ;;  %v1358_v57 = vld [vmem:[#allocation5 + $0xa0] ss:$8 sps:$4 sm:$0xff]   ;;  %v1359_v58 = vld [vmem:[#allocation5 + $0xb4] ss:$8 sps:$4 sm:$0xff]  }
  0x3a   :  { %v1361_v59 = vld [vmem:[#allocation5 + $0xb0] ss:$8 sps:$4 sm:$0xff]   ;;  %v1362_v60 = vld [vmem:[#allocation5 + $0xc4] ss:$8 sps:$4 sm:$0xff]   ;;  %v1364_v61 = vld [vmem:[#allocation5 + $0xc0] ss:$8 sps:$4 sm:$0xff]  }
  0x3b   :  { %v1365_v62 = vld [vmem:[#allocation5 + $0xd4] ss:$8 sps:$4 sm:$0xff]   ;;  %v1367_v63 = vld [vmem:[#allocation5 + $0xd0] ss:$8 sps:$4 sm:$0xff]   ;;  %v1368_v0 = vld [vmem:[#allocation5 + $0xe4] ss:$8 sps:$4 sm:$0xff]  }
  0x3c   :  { %292 = vmatpush1.bf16.msra.mxu0 %v1289_v11  ;;  %683 = vmatpush1.bf16.msra.mxu1 %v1334_v41  ;;  %v1370_v1 = vld [vmem:[#allocation5 + $0xe0] ss:$8 sps:$4 sm:$0xff]   ;;  %v1371_v2 = vld [vmem:[#allocation5 + $0xf4] ss:$8 sps:$4 sm:$0xff]   ;;  %v1373_v3 = vld [vmem:[#allocation5 + $0xf0] ss:$8 sps:$4 sm:$0xff]  }
  0x3d   :  { %293 = vmatprep.subr.bf16.mxu0 %v1290_v12  ;;  %684 = vmatprep.subr.bf16.mxu1 %v1335_v42  ;;  %s1477_s20 = smov [#allocation7]  }
  0x3e   :  { %s1125_s21 = sshll.u32 %s1477_s20, 4  ;;  %s1126_s21 = int_to_ptr.vmem [resolvable:$true] %s1125_s21 }
  0x3f   :  { %p1449_p3 = scmp.lt.s32.totalorder %s1126_s21, %s1126_s21 }
  0x40   :  { %294 = vmatpush1.bf16.msra.mxu0 %v1292_v14  ;;  %685 = vmatpush1.bf16.msra.mxu1 %v1337_v43 }
  0x41   :  { %295 = vmatprep.subr.bf16.mxu0 %v1293_v15  ;;  %686 = vmatprep.subr.bf16.mxu1 %v1338_v44 }
  0x44   :  { %296 = vmatpush1.bf16.msra.mxu0 %v1295_v16  ;;  %687 = vmatpush1.bf16.msra.mxu1 %v1340_v45 }
  0x45   :  { %297 = vmatprep.subr.bf16.mxu0 %v1296_v17  ;;  %688 = vmatprep.subr.bf16.mxu1 %v1341_v46 }
  0x48   :  { %298 = vmatpush1.bf16.msra.mxu0 %v1298_v18  ;;  %689 = vmatpush1.bf16.msra.mxu1 %v1343_v47 }
  0x49   :  { %299 = vmatprep.subr.bf16.mxu0 %v1299_v19  ;;  %690 = vmatprep.subr.bf16.mxu1 %v1344_v48 }
  0x4c   :  { %300 = vmatpush1.bf16.msra.mxu0 %v1301_v20  ;;  %691 = vmatpush1.bf16.msra.mxu1 %v1346_v49 }
  0x4d   :  { %301 = vmatprep.subr.bf16.mxu0 %v1302_v21  ;;  %692 = vmatprep.subr.bf16.mxu1 %v1347_v50 }
  0x50   :  { %302 = vmatpush1.bf16.msra.mxu0 %v1304_v22  ;;  %693 = vmatpush1.bf16.msra.mxu1 %v1349_v51 }
  0x51   :  { %303 = vmatprep.subr.bf16.mxu0 %v1305_v23  ;;  %694 = vmatprep.subr.bf16.mxu1 %v1350_v52 }
  0x54   :  { %304 = vmatpush1.bf16.msra.mxu0 %v1307_v24  ;;  %695 = vmatpush1.bf16.msra.mxu1 %v1352_v53 }
  0x55   :  { %305 = vmatprep.subr.bf16.mxu0 %v1308_v25  ;;  %696 = vmatprep.subr.bf16.mxu1 %v1353_v54 }
  0x58   :  { %306 = vmatpush1.bf16.msra.mxu0 %v1310_v26  ;;  %697 = vmatpush1.bf16.msra.mxu1 %v1355_v55 }
  0x59   :  { %307 = vmatprep.subr.bf16.mxu0 %v1311_v27  ;;  %698 = vmatprep.subr.bf16.mxu1 %v1356_v56 }
  0x5c   :  { %308 = vmatpush1.bf16.msra.mxu0 %v1313_v28  ;;  %699 = vmatpush1.bf16.msra.mxu1 %v1358_v57 }
  0x5d   :  { %309 = vmatprep.subr.bf16.mxu0 %v1314_v29  ;;  %700 = vmatprep.subr.bf16.mxu1 %v1359_v58 }
  0x60   :  { %310 = vmatpush1.bf16.msra.mxu0 %v1316_v30  ;;  %701 = vmatpush1.bf16.msra.mxu1 %v1361_v59 }
  0x61   :  { %311 = vmatprep.subr.bf16.mxu0 %v1317_v31  ;;  %702 = vmatprep.subr.bf16.mxu1 %v1362_v60 }
  0x64   :  { %312 = vmatpush1.bf16.msra.mxu0 %v1319_v32  ;;  %703 = vmatpush1.bf16.msra.mxu1 %v1364_v61 }
  0x65   :  { %704 = vmatprep.subr.bf16.mxu1 %v1365_v62 }
  0x67   :  { %314 = vmatmul.mubr.bf16.vlgmr.msra.gmra.mrb[0].mxu0 %v1320_v33 }
  0x68   :  { %323 = vmatprep.mubr.bf16.mxu0 %v1323_v34  ;;  %705 = vmatpush1.bf16.msra.mxu1 %v1367_v63 }
  0x69   :  { %706 = vmatprep.subr.bf16.mxu1 %v1368_v0 }
  0x6c   :  { %707 = vmatpush1.bf16.msra.mxu1 %v1370_v1 }
  0x6d   :  { %708 = vmatprep.subr.bf16.mxu1 %v1371_v2 }
  0x6f   :  { %324 = vmatmul.mubr.bf16.gmra.mrb[4].mxu0 %v1325_v35 }
  0x70   :  { %709 = vmatpush1.bf16.msra.mxu1 %v1373_v3 }
 0x13a   :  { %v1575_v4 = vpop.f32.mrb[0].mxu0 }
 0x13b   :  { %v1577_v5 = vpop.f32.mrb[1].mxu0 }
 0x13c   :  { %v1579_v6 = vpop.f32.mrb[2].mxu0 }
 0x13d   :  { %v334_v7 = vadd.f32 %v1579_v6, %v1575_v4  ;;  %v1583_v8 = vpop.f32.mrb[3].mxu0 }
 0x13e   :  { %v343_v9 = vadd.f32 %v1583_v8, %v1577_v5 }
 0x142   :  { %v1587_v10 = vpop.f32.mrb[4].mxu0 }
 0x143   :  { %v335_v11 = vadd.f32 %v334_v7, %v1587_v10  ;;  %v1590_v12 = vpop.f32.mrb[5].mxu0 }
 0x144   :  { %v344_v13 = vadd.f32 %v343_v9, %v1590_v12  ;;  %v1593_v14 = vpop.f32.mrb[6].mxu0 }
 0x145   :  { %v336_v15 = vadd.f32 %v335_v11, %v1593_v14  ;;  %v1596_v16 = vpop.f32.mrb[7].mxu0  ;;  %v1476_v11 = vmov 1966171168  }
 0x146   :  { %v345_v17 = vadd.f32 %v344_v13, %v1596_v16  ;;  %v399_v13 = vunpack.c.l.s4 %v1476_v11  ;;  %v1384_v11 = vld [vmem:[%s1769_s7 + $0x68] sm:$0xff]  }
 0x147   :  { %v337_v18 = vrot.slane %v336_v15, 4 }
 0x148   :  { %v346_v19 = vrot.slane %v345_v17, 4 }
 0x149   :  { %v338_v20 = vadd.f32 %v337_v18, %v336_v15  ;;  %v401_v15 = vlaneseq }
 0x14a   :  { %v347_v21 = vadd.f32 %v346_v19, %v345_v17  ;;  %v400_v17 = vunpack.c.0.s8 %v399_v13  ;;  %v1385_v13 = vld [vmem:[%s1769_s7 + $0x28] sm:$0xff]  }
 0x14b   :  { %v339_v22 = vrot.slane %v338_v20, 2  ;;  %v402_v18 = vshrl.u32 %v401_v15, 7  ;;  %v1386_v15 = vld [vmem:[%s1769_s7 + $0x70] sm:$0xff]  }
 0x14c   :  { %v348_v23 = vrot.slane %v347_v21, 2 }
 0x14d   :  { %v340_v24 = vadd.f32 %v339_v22, %v338_v20  ;;  %v1607_v20 = vsub.s32 %v400_v17, %v402_v18  ;;  %v1387_v17 = vld [vmem:[%s1769_s7 + $0x30] sm:$0xff]  }
 0x14e   :  { %v349_v25 = vadd.f32 %v348_v23, %v347_v21 }
 0x14f   :  { %v341_v26 = vrot.slane %v340_v24, 1 }
 0x150   :  { %v350_v27 = vrot.slane %v349_v25, 1 }
 0x151   :  { %v342_v28 = vadd.f32 %v341_v26, %v340_v24  ;;  %v390_v24 = vld [vmem:[%s1764_s2] sm:$0x3]  ;;  %v1614_v26 = vsub.s32 0, %v402_v18 }
 0x152   :  { %v351_v29 = vadd.f32 %v350_v27, %v349_v25  ;;  %v1616_v27 = vsub.s32 1, %v402_v18  ;;  %v1388_v18 = vld [vmem:[%s1769_s7 + $0x78] sm:$0xff]  }
 0x153   :  { %v352_v30 = vmul.f32 0.03125, %v342_v28 }
 0x154   :  { %v353_v31 = vmul.f32 0.03125, %v351_v29 }
 0x155   :  { %v354_v32 = vsub.f32 %v1575_v4, %v352_v30  ;;  %v356_v33 = vsub.f32 %v1579_v6, %v352_v30  ;;  %v358_v34 = vsub.f32 %v1587_v10, %v352_v30  ;;  %v360_v35 = vsub.f32 %v1593_v14, %v352_v30 }
 0x156   :  { %v355_v36 = vsub.f32 %v1577_v5, %v353_v31  ;;  %v357_v37 = vsub.f32 %v1583_v8, %v353_v31  ;;  %v359_v38 = vsub.f32 %v1590_v12, %v353_v31  ;;  %v361_v39 = vsub.f32 %v1596_v16, %v353_v31 }
 0x157   :  { %v362_v40 = vmul.f32 %v354_v32, %v354_v32  ;;  %v364_v41 = vmul.f32 %v356_v33, %v356_v33  ;;  %v366_v44 = vmul.f32 %v358_v34, %v358_v34  ;;  %v368_v48 = vmul.f32 %v360_v35, %v360_v35 }
 0x158   :  { %v363_v42 = vmul.f32 %v355_v36, %v355_v36  ;;  %v365_v43 = vmul.f32 %v357_v37, %v357_v37  ;;  %v367_v46 = vmul.f32 %v359_v38, %v359_v38  ;;  %v369_v50 = vmul.f32 %v361_v39, %v361_v39 }
 0x159   :  { %v370_v45 = vadd.f32 %v364_v41, %v362_v40 }
 0x15a   :  { %v379_v47 = vadd.f32 %v365_v43, %v363_v42 }
 0x15b   :  { %v371_v49 = vadd.f32 %v370_v45, %v366_v44 }
 0x15c   :  { %v380_v51 = vadd.f32 %v379_v47, %v367_v46 }
 0x15d   :  { %v372_v52 = vadd.f32 %v371_v49, %v368_v48 }
 0x15e   :  { %v381_v53 = vadd.f32 %v380_v51, %v369_v50 }
 0x15f   :  { %v373_v54 = vrot.slane %v372_v52, 4 }
 0x160   :  { %v382_v55 = vrot.slane %v381_v53, 4 }
 0x161   :  { %v374_v56 = vadd.f32 %v373_v54, %v372_v52 }
 0x162   :  { %v383_v57 = vadd.f32 %v382_v55, %v381_v53 }
 0x163   :  { %v375_v58 = vrot.slane %v374_v56, 2 }
 0x164   :  { %v384_v59 = vrot.slane %v383_v57, 2 }
 0x165   :  { %v376_v60 = vadd.f32 %v375_v58, %v374_v56 }
 0x166   :  { %v385_v61 = vadd.f32 %v384_v59, %v383_v57 }
 0x167   :  { %v377_v62 = vrot.slane %v376_v60, 1 }
 0x168   :  { %v386_v63 = vrot.slane %v385_v61, 1 }
 0x169   :  { %v378_v0 = vadd.f32 %v377_v62, %v376_v60  ;;  %v1374_v60 = vld [vmem:[%s1769_s7 + $0x40] sm:$0xff]   ;;  %v1376_v62 = vld [vmem:[%s1769_s7 + $0x48] sm:$0xff]  }
 0x16a   :  { %v387_v1 = vadd.f32 %v386_v63, %v385_v61  ;;  %v1375_v61 = vld [vmem:[%s1769_s7] sm:$0xff]   ;;  %1222 = vmatprep.subr.bf16.mxu0 %v1374_v60  ;;  %1250 = vmatprep.subr.bf16.mxu1 %v1374_v60  ;;  %v1377_v63 = vld [vmem:[%s1769_s7 + $0x8] sm:$0xff]  }
 0x16b   :  { %v388_v2 = vmul.f32 0.03125, %v378_v0  ;;  %1223 = vmatpush3.bf16.msra.mxu0 %v1375_v61  ;;  %v1378_v0 = vld [vmem:[%s1769_s7 + $0x50] sm:$0xff]  }
 0x16c   :  { %v389_v3 = vmul.f32 0.03125, %v387_v1  ;;  %1224 = vmatprep.subr.bf16.mxu0 %v1376_v62  ;;  %v1379_v1 = vld [vmem:[%s1769_s7 + $0x10] sm:$0xff]  }
 0x16d   :  { %v391_v7 = vadd.f32 1e-05, %v388_v2  ;;  %v1380_v2 = vld [vmem:[%s1769_s7 + $0x58] sm:$0xff]  }
 0x16e   :  { %v392_v9 = vadd.f32 1e-05, %v389_v3  ;;  %v1381_v3 = vld [vmem:[%s1769_s7 + $0x18] sm:$0xff]  }
 0x16f   :  { %1390 = vrsqrt.f32 %v391_v7  ;;  %1225 = vmatpush3.bf16.msra.mxu0 %v1377_v63  ;;  %v1382_v7 = vld [vmem:[%s1769_s7 + $0x60] sm:$0xff]  }
 0x170   :  { %1392 = vrsqrt.f32 %v392_v9  ;;  %1226 = vmatprep.subr.bf16.mxu0 %v1378_v0  ;;  %v1383_v9 = vld [vmem:[%s1769_s7 + $0x20] sm:$0xff]  }
 0x173   :  { %1227 = vmatpush3.bf16.msra.mxu0 %v1379_v1 }
 0x174   :  { %1228 = vmatprep.subr.bf16.mxu0 %v1380_v2 }
 0x177   :  { %1229 = vmatpush3.bf16.msra.mxu0 %v1381_v3 }
 0x178   :  { %1230 = vmatprep.subr.bf16.mxu0 %v1382_v7 }
 0x179   :  { %v1391_v19 = vpop.eup %1390 }
 0x17a   :  { %v1393_v21 = vpop.eup %1392 }
 0x17b   :  { %v397_v22 = vcombine.low %v1391_v19, %v1393_v21  ;;  %1231 = vmatpush3.bf16.msra.mxu0 %v1383_v9  ;;  %v1389_v19 = vld [vmem:[%s1769_s7 + $0x38] sm:$0xff]  }
 0x17c   :  { %1232 = vmatprep.subr.bf16.mxu0 %v1384_v11 }
 0x17d   :  { %v404_v23 = vrot.slane %v397_v22, %v1607_v20 }
 0x17f   :  { %v411_v25 = vrot.slane %v404_v23, %v1607_v20  ;;  %1233 = vmatpush3.bf16.msra.mxu0 %v1385_v13 }
 0x180   :  { %1234 = vmatprep.subr.bf16.mxu0 %v1386_v15 }
 0x181   :  { %v413_v28 = vmul.f32 %v411_v25, %v390_v24 }
 0x183   :  { %v419_v29 = vrot.slane %v413_v28, %v1614_v26  ;;  %v423_v32 = vrot.slane %v413_v28, %v1616_v27  ;;  %1235 = vmatpush3.bf16.msra.mxu0 %v1387_v17 }
 0x184   :  { %1236 = vmatprep.subr.bf16.mxu0 %v1388_v18 }
 0x185   :  { %v426_v33 = vmul.f32 %v419_v29, %v352_v30  ;;  %v427_v34 = vmul.f32 %v423_v32, %v353_v31  ;;  %v454_v35 = vmul.f32 %v423_v32, %v1596_v16  ;;  %v448_v36 = vmul.f32 %v423_v32, %v1577_v5  ;;  %v414_v16 = vld [vmem:[%s1765_s3] sm:$0x3] }
 0x186   :  { %v450_v37 = vmul.f32 %v423_v32, %v1583_v8  ;;  %v447_v38 = vmul.f32 %v419_v29, %v1575_v4  ;;  %v449_v39 = vmul.f32 %v419_v29, %v1579_v6  ;;  %v452_v40 = vmul.f32 %v423_v32, %v1590_v12 }
 0x187   :  { %v430_v41 = vcombine.low %v426_v33, %v427_v34  ;;  %v451_v42 = vmul.f32 %v419_v29, %v1587_v10  ;;  %v453_v43 = vmul.f32 %v419_v29, %v1593_v14  ;;  %1237 = vmatpush3.bf16.msra.mxu0 %v1389_v19 }
 0x189   :  { %v437_v30 = vrot.slane %v430_v41, %v1607_v20 }
 0x18b   :  { %v444_v5 = vrot.slane %v437_v30, %v1607_v20 }
 0x18d   :  { %v446_v8 = vsub.f32 %v414_v16, %v444_v5 }
 0x18f   :  { %v463_v4 = vrot.slane %v446_v8, %v1616_v27  ;;  %v459_v6 = vrot.slane %v446_v8, %v1614_v26 }
 0x191   :  { %v473_v31 = vadd.f32 %v463_v4, %v454_v35  ;;  %v467_v12 = vadd.f32 %v463_v4, %v448_v36  ;;  %v469_v44 = vadd.f32 %v463_v4, %v450_v37  ;;  %v466_v45 = vadd.f32 %v459_v6, %v447_v38 }
 0x192   :  { %v468_v10 = vadd.f32 %v459_v6, %v449_v39  ;;  %v471_v46 = vadd.f32 %v463_v4, %v452_v40  ;;  %v470_v14 = vadd.f32 %v459_v6, %v451_v42  ;;  %v472_v47 = vadd.f32 %v459_v6, %v453_v43 }
 0x193   :  { %v475_v48 = vmax.f32 %v467_v12, 0.0  ;;  %v477_v49 = vmax.f32 %v469_v44, 0.0  ;;  %v474_v50 = vmax.f32 %v466_v45, 0.0  ;;  %v481_v51 = vmax.f32 %v473_v31, 0.0 }
 0x194   :  { %v476_v52 = vmax.f32 %v468_v10, 0.0  ;;  %v479_v53 = vmax.f32 %v471_v46, 0.0  ;;  %v478_v54 = vmax.f32 %v470_v14, 0.0  ;;  %v480_v55 = vmax.f32 %v472_v47, 0.0 }
 0x195   :  { %v483_v56 = vpack.c.bf16 %v477_v49, %v475_v48 }
 0x196   :  { %v482_v57 = vpack.c.bf16 %v476_v52, %v474_v50  ;;  %v485_v58 = vpack.c.bf16 %v481_v51, %v479_v53  ;;  %v484_v59 = vpack.c.bf16 %v480_v55, %v478_v54 }
 0x197   :  { %710 = vmatprep.mubr.bf16.mxu1 %v483_v56 }
 0x198   :  { %711 = vmatmul.mubr.bf16.vlgmr.msra.gmra.mrb[0].mxu1 %v482_v57 }
 0x199   :  { %720 = vmatprep.mubr.bf16.mxu1 %v485_v58  ;;  %1258 = vmatpush3.bf16.msra.mxu1 %v1375_v61 }
 0x19a   :  { %1251 = vmatprep.subr.bf16.mxu1 %v1376_v62 }
 0x19d   :  { %1259 = vmatpush3.bf16.msra.mxu1 %v1377_v63 }
 0x19e   :  { %1252 = vmatprep.subr.bf16.mxu1 %v1378_v0 }
 0x1a0   :  { %721 = vmatmul.mubr.bf16.gmra.mrb[4].mxu1 %v484_v59 }
 0x1a1   :  { %1260 = vmatpush3.bf16.msra.mxu1 %v1379_v1 }
 0x1a2   :  { %1253 = vmatprep.subr.bf16.mxu1 %v1380_v2 }
 0x1a5   :  { %1261 = vmatpush3.bf16.msra.mxu1 %v1381_v3 }
 0x1a6   :  { %1254 = vmatprep.subr.bf16.mxu1 %v1382_v7 }
 0x1a9   :  { %1262 = vmatpush3.bf16.msra.mxu1 %v1383_v9 }
 0x1aa   :  { %1255 = vmatprep.subr.bf16.mxu1 %v1384_v11 }
 0x1ad   :  { %1263 = vmatpush3.bf16.msra.mxu1 %v1385_v13 }
 0x1ae   :  { %1256 = vmatprep.subr.bf16.mxu1 %v1386_v15 }
 0x1b1   :  { %1264 = vmatpush3.bf16.msra.mxu1 %v1387_v17 }
 0x1b2   :  { %1257 = vmatprep.subr.bf16.mxu1 %v1388_v18 }
 0x1b5   :  { %1265 = vmatpush3.bf16.msra.mxu1 %v1389_v19 }
 0x26b   :  { %v1683_v21 = vpop.f32.mrb[0].mxu1 }
 0x26c   :  { %v1685_v22 = vpop.f32.mrb[1].mxu1  ;;  %v751_v24 = vmul.f32 %v1683_v21, %v1683_v21 }
 0x26d   :  { %v1687_v23 = vpop.f32.mrb[2].mxu1  ;;  %v752_v32 = vmul.f32 %v1685_v22, %v1685_v22 }
 0x26e   :  { %v731_v25 = vadd.f32 %v1687_v23, %v1683_v21  ;;  %v753_v28 = vmul.f32 %v1687_v23, %v1687_v23  ;;  %v1695_v29 = vpop.f32.mrb[3].mxu1 }
 0x26f   :  { %v740_v33 = vadd.f32 %v1695_v29, %v1685_v22  ;;  %v754_v34 = vmul.f32 %v1695_v29, %v1695_v29 }
 0x270   :  { %v759_v35 = vadd.f32 %v753_v28, %v751_v24 }
 0x271   :  { %v768_v36 = vadd.f32 %v754_v34, %v752_v32 }
 0x273   :  { %v1703_v37 = vpop.f32.mrb[4].mxu1 }
 0x274   :  { %v732_v38 = vadd.f32 %v731_v25, %v1703_v37  ;;  %v755_v39 = vmul.f32 %v1703_v37, %v1703_v37  ;;  %v1708_v40 = vpop.f32.mrb[5].mxu1 }
 0x275   :  { %v741_v41 = vadd.f32 %v740_v33, %v1708_v40  ;;  %v756_v42 = vmul.f32 %v1708_v40, %v1708_v40  ;;  %v1713_v43 = vpop.f32.mrb[6].mxu1 }
 0x276   :  { %v760_v30 = vadd.f32 %v759_v35, %v755_v39  ;;  %v733_v16 = vadd.f32 %v732_v38, %v1713_v43  ;;  %v757_v5 = vmul.f32 %v1713_v43, %v1713_v43  ;;  %v728_v8 = vpop.f32.mrb[7].mxu1 }
 0x277   :  { %v769_v4 = vadd.f32 %v768_v36, %v756_v42  ;;  %v742_v6 = vadd.f32 %v741_v41, %v728_v8  ;;  %v758_v31 = vmul.f32 %v728_v8, %v728_v8  ;;  %v785_v36 = vld [vmem:[%s1767_s5] sm:$0x3] }
 0x278   :  { %v734_v12 = vrot.slane %v733_v16, 4  ;;  %v761_v44 = vadd.f32 %v760_v30, %v757_v5 }
 0x279   :  { %v743_v45 = vrot.slane %v742_v6, 4  ;;  %v770_v10 = vadd.f32 %v769_v4, %v758_v31 }
 0x27a   :  { %v735_v46 = vadd.f32 %v734_v12, %v733_v16  ;;  %v762_v14 = vrot.slane %v761_v44, 4 }
 0x27b   :  { %v744_v47 = vadd.f32 %v743_v45, %v742_v6  ;;  %v771_v48 = vrot.slane %v770_v10, 4 }
 0x27c   :  { %v736_v49 = vrot.slane %v735_v46, 2  ;;  %v763_v50 = vadd.f32 %v762_v14, %v761_v44 }
 0x27d   :  { %v745_v51 = vrot.slane %v744_v47, 2  ;;  %v772_v52 = vadd.f32 %v771_v48, %v770_v10 }
 0x27e   :  { %v737_v53 = vadd.f32 %v736_v49, %v735_v46  ;;  %v764_v54 = vrot.slane %v763_v50, 2 }
 0x27f   :  { %v746_v55 = vadd.f32 %v745_v51, %v744_v47  ;;  %v773_v56 = vrot.slane %v772_v52, 2 }
 0x280   :  { %v738_v57 = vrot.slane %v737_v53, 1  ;;  %v765_v58 = vadd.f32 %v764_v54, %v763_v50 }
 0x281   :  { %v747_v59 = vrot.slane %v746_v55, 1  ;;  %v774_v60 = vadd.f32 %v773_v56, %v772_v52 }
 0x282   :  { %v739_v61 = vadd.f32 %v738_v57, %v737_v53  ;;  %v766_v62 = vrot.slane %v765_v58, 1 }
 0x283   :  { %v748_v63 = vadd.f32 %v747_v59, %v746_v55  ;;  %v775_v0 = vrot.slane %v774_v60, 1 }
 0x284   :  { %v749_v1 = vmul.f32 0.03125, %v739_v61  ;;  %v767_v2 = vadd.f32 %v766_v62, %v765_v58 }
 0x285   :  { %v750_v3 = vmul.f32 0.03125, %v748_v63  ;;  %v776_v7 = vadd.f32 %v775_v0, %v774_v60 }
 0x286   :  { %v777_v9 = vmul.f32 0.03125, %v767_v2  ;;  %v779_v11 = vmul.f32 %v749_v1, %v749_v1 }
 0x287   :  { %v778_v13 = vmul.f32 0.03125, %v776_v7  ;;  %v780_v15 = vmul.f32 %v750_v3, %v750_v3 }
 0x288   :  { %v781_v17 = vsub.f32 %v777_v9, %v779_v11 }
 0x289   :  { %v782_v18 = vsub.f32 %v778_v13, %v780_v15 }
 0x28a   :  { %v783_v19 = vmax.f32 %v781_v17, 0.0 }
 0x28b   :  { %v784_v24 = vmax.f32 %v782_v18, 0.0 }
 0x28c   :  { %v786_v25 = vadd.f32 1e-05, %v783_v19 }
 0x28d   :  { %v787_v28 = vadd.f32 1e-05, %v784_v24 }
 0x28e   :  { %1394 = vrsqrt.f32 %v786_v25 }
 0x28f   :  { %1396 = vrsqrt.f32 %v787_v28 }
 0x298   :  { %v1395_v32 = vpop.eup %1394 }
 0x299   :  { %v1397_v33 = vpop.eup %1396 }
 0x29a   :  { %v792_v34 = vcombine.low %v1395_v32, %v1397_v33 }
 0x29c   :  { %v799_v35 = vrot.slane %v792_v34, %v1607_v20 }
 0x29e   :  { %v806_v38 = vrot.slane %v799_v35, %v1607_v20 }
 0x2a0   :  { %v808_v39 = vmul.f32 %v806_v38, %v785_v36 }
 0x2a2   :  { %v814_v41 = vrot.slane %v808_v39, %v1614_v26  ;;  %v818_v42 = vrot.slane %v808_v39, %v1616_v27 }
 0x2a4   :  { %v821_v30 = vmul.f32 %v814_v41, %v749_v1  ;;  %v822_v16 = vmul.f32 %v818_v42, %v750_v3  ;;  %v849_v5 = vmul.f32 %v818_v42, %v728_v8  ;;  %v843_v4 = vmul.f32 %v818_v42, %v1685_v22  ;;  %v809_v8 = vld [vmem:[%s1768_s6] sm:$0x3] }
 0x2a5   :  { %v845_v6 = vmul.f32 %v818_v42, %v1695_v29  ;;  %v847_v31 = vmul.f32 %v818_v42, %v1708_v40  ;;  %v842_v12 = vmul.f32 %v814_v41, %v1683_v21  ;;  %v844_v44 = vmul.f32 %v814_v41, %v1687_v23 }
 0x2a6   :  { %v825_v45 = vcombine.low %v821_v30, %v822_v16  ;;  %v846_v10 = vmul.f32 %v814_v41, %v1703_v37  ;;  %v848_v46 = vmul.f32 %v814_v41, %v1713_v43 }
 0x2a8   :  { %v832_v14 = vrot.slane %v825_v45, %v1607_v20 }
 0x2aa   :  { %v839_v22 = vrot.slane %v832_v14, %v1607_v20 }
 0x2ac   :  { %v841_v29 = vsub.f32 %v809_v8, %v839_v22 }
 0x2ae   :  { %v854_v40 = vrot.slane %v841_v29, %v1614_v26  ;;  %v858_v21 = vrot.slane %v841_v29, %v1616_v27  ;;  %v1085_v29 = vld [vmem:[%s1770_s8] sm:$0x1]  ;;  %s1444_s8 = scalar_lea.vmem %s1126_s21, 512 }
 0x2af   :  { %p1445_p2 = scmp.ne.s32.totalorder %s1126_s21, %s1444_s8  ;;  %p1450_p4 = scmp.lt.s32.totalorder %s1444_s8, %s1444_s8 }
 0x2b0   :  { %v868_v47 = vadd.f32 %v858_v21, %v849_v5  ;;  %v862_v23 = vadd.f32 %v858_v21, %v843_v4  ;;  %v864_v48 = vadd.f32 %v858_v21, %v845_v6  ;;  %v866_v49 = vadd.f32 %v858_v21, %v847_v31 }
 0x2b1   :  { %v861_v37 = vadd.f32 %v854_v40, %v842_v12  ;;  %v863_v50 = vadd.f32 %v854_v40, %v844_v44  ;;  %v865_v43 = vadd.f32 %v854_v40, %v846_v10  ;;  %v867_v51 = vadd.f32 %v854_v40, %v848_v46  ;;  %p1451_p5 = por %p1450_p4, %p1449_p3 }
 0x2b2   :  { %v870_v52 = vmax.f32 %v862_v23, 0.0  ;;  %v872_v53 = vmax.f32 %v864_v48, 0.0  ;;  %v874_v54 = vmax.f32 %v866_v49, 0.0  ;;  %v876_v55 = vmax.f32 %v868_v47, 0.0  ;;  %v1089_v47 = vld [vmem:[%s1771_s9] sm:$0x1] }
 0x2b3   :  { %v869_v56 = vmax.f32 %v861_v37, 0.0  ;;  %v871_v57 = vmax.f32 %v863_v50, 0.0  ;;  %v873_v20 = vmax.f32 %v865_v43, 0.0  ;;  %v875_v58 = vmax.f32 %v867_v51, 0.0  ;;  %p1452_p6 = pnand %p1451_p5, %p1445_p2 }
 0x2b4   :  { %v878_v59 = vpack.c.bf16 %v872_v53, %v870_v52  ;;  %v880_v60 = vpack.c.bf16 %v876_v55, %v874_v54 }
 0x2b5   :  { %v877_v61 = vpack.c.bf16 %v871_v57, %v869_v56  ;;  %v879_v27 = vpack.c.bf16 %v875_v58, %v873_v20 }
 0x2b6   :  { %1041 = vmatprep.mubr.bf16.mxu0 %v878_v59  ;;  %1049 = vmatprep.mubr.bf16.mxu1 %v880_v60 }
 0x2b7   :  { %1042 = vmatmul.mubr.bf16.vlgmr.msra.gmra.mrb[8].mxu0 %v877_v61  ;;  %1050 = vmatmul.mubr.bf16.vlgmr.msra.gmra.mrb[8].mxu1 %v879_v27 }
 0x38a   :  { %v1238_v62 = vpop.f32.mrb[8].mxu0  ;;  %v1244_v63 = vpop.f32.mrb[8].mxu1 }
 0x38b   :  { %v1239_v0 = vpop.f32.mrb[9].mxu0  ;;  %v1245_v1 = vpop.f32.mrb[9].mxu1 }
 0x38c   :  { %v1240_v2 = vadd.f32 %v1239_v0, %v1238_v62  ;;  %v1246_v3 = vadd.f32 %v1245_v1, %v1244_v63  ;;  %v1241_v7 = vpop.f32.mrb[10].mxu0  ;;  %v1247_v9 = vpop.f32.mrb[10].mxu1 }
 0x38d   :  { %v1242_v11 = vpop.f32.mrb[11].mxu0  ;;  %v1248_v13 = vpop.f32.mrb[11].mxu1 }
 0x38e   :  { %v1243_v15 = vadd.f32 %v1242_v11, %v1241_v7  ;;  %v1249_v17 = vadd.f32 %v1248_v13, %v1247_v9  ;;  %v1068_v18 = vmul.f32 %v1240_v2, %v1240_v2  ;;  %v1070_v25 = vmul.f32 %v1246_v3, %v1246_v3 }
 0x390   :  { %v1058_v19 = vadd.f32 %v1243_v15, %v1240_v2  ;;  %v1069_v24 = vmul.f32 %v1243_v15, %v1243_v15  ;;  %v1071_v34 = vmul.f32 %v1249_v17, %v1249_v17 }
 0x392   :  { %v1072_v28 = vadd.f32 %v1069_v24, %v1068_v18  ;;  %v1059_v32 = vadd.f32 %v1246_v3, %v1058_v19 }
 0x394   :  { %v1060_v33 = vadd.f32 %v1249_v17, %v1059_v32  ;;  %v1073_v35 = vadd.f32 %v1072_v28, %v1070_v25 }
 0x396   :  { %v1061_v36 = vrot.slane %v1060_v33, 4  ;;  %v1074_v38 = vadd.f32 %v1073_v35, %v1071_v34 }
 0x398   :  { %v1062_v39 = vadd.f32 %v1061_v36, %v1060_v33  ;;  %v1075_v41 = vrot.slane %v1074_v38, 4 }
 0x39a   :  { %v1063_v42 = vrot.slane %v1062_v39, 2  ;;  %v1076_v30 = vadd.f32 %v1075_v41, %v1074_v38 }
 0x39c   :  { %v1064_v16 = vadd.f32 %v1063_v42, %v1062_v39  ;;  %v1077_v5 = vrot.slane %v1076_v30, 2 }
 0x39e   :  { %v1065_v4 = vrot.slane %v1064_v16, 1  ;;  %v1078_v6 = vadd.f32 %v1077_v5, %v1076_v30 }
 0x3a0   :  { %v1066_v31 = vadd.f32 %v1065_v4, %v1064_v16  ;;  %v1079_v12 = vrot.slane %v1078_v6, 1 }
 0x3a2   :  { %v1067_v44 = vmul.f32 0.03125, %v1066_v31  ;;  %v1080_v45 = vadd.f32 %v1079_v12, %v1078_v6 }
 0x3a4   :  { %v1081_v10 = vmul.f32 0.03125, %v1080_v45  ;;  %v1082_v46 = vmul.f32 %v1067_v44, %v1067_v44 }
 0x3a6   :  { %v1083_v14 = vsub.f32 %v1081_v10, %v1082_v46 }
 0x3a8   :  { %v1084_v8 = vmax.f32 %v1083_v14, 0.0 }
 0x3aa   :  { %v1086_v22 = vadd.f32 1e-05, %v1084_v8 }
 0x3ac   :  { %1398 = vrsqrt.f32 %v1086_v22 }
 0x3b6   :  { %v1399_v40 = vpop.eup %1398 }
 0x3b7   :  { %v1088_v21 = vmul.f32 %v1399_v40, %v1085_v29 }
 0x3b9   :  { %v1090_v23 = vmul.f32 %v1088_v21, %v1067_v44  ;;  %v1096_v48 = vrot.slane %v1088_v21, %v1614_v26 }
 0x3bb   :  { %v1091_v49 = vsub.f32 %v1089_v47, %v1090_v23  ;;  %v1101_v37 = vmul.f32 %v1249_v17, %v1096_v48  ;;  %v1098_v50 = vmul.f32 %v1240_v2, %v1096_v48  ;;  %v1099_v43 = vmul.f32 %v1243_v15, %v1096_v48 }
 0x3bc   :  { %v1100_v51 = vmul.f32 %v1246_v3, %v1096_v48 }
 0x3bd   :  { %v1106_v52 = vrot.slane %v1091_v49, %v1614_v26 }
 0x3bf   :  { %v1111_v53 = vadd.f32 %v1106_v52, %v1101_v37  ;;  %v1108_v54 = vadd.f32 %v1106_v52, %v1098_v50  ;;  %v1109_v55 = vadd.f32 %v1106_v52, %v1099_v43  ;;  %v1110_v56 = vadd.f32 %v1106_v52, %v1100_v51 }
 0x3c1   :  { %v1115_v57 = vmax.f32 %v1111_v53, 0.0  ;;  %v1112_v20 = vmax.f32 %v1108_v54, 0.0  ;;  %v1113_v58 = vmax.f32 %v1109_v55, 0.0  ;;  %v1114_v59 = vmax.f32 %v1110_v56, 0.0 }
 0x3c3   :  { %1119 = vst [vmem:[#allocation7 + $0x18] sm:$0xff] %v1115_v57  ;;  %1116 = vst [vmem:[#allocation7] sm:$0xff] %v1112_v20 }
 0x3c4   :  { %1117 = vst [vmem:[#allocation7 + $0x8] sm:$0xff] %v1113_v58  ;;  %1118 = vst [vmem:[#allocation7 + $0x10] sm:$0xff] %v1114_v59 }
 0x3c5   :  { %1455 = shalt.err (!%p1452_p6)
}
 0x3c6   :  { %s1456_s25 = scalar_lea.hbm %s1772_s10, 512 }
 0x3c7   :  { %p1457_p7 = scmp.ne.s32.totalorder %s1772_s10, %s1456_s25  ;;  %p1460_p8 = scmp.lt.u32.totalorder %s1456_s25, %s1772_s10 }
 0x3c9   :  { %p1462_p9 = pnand %p1460_p8, %p1457_p7 }
 0x3cb   :  { %1465 = shalt.err (!%p1462_p9)
}
 0x3cc   :  { %1131 = dma.vmem_to_hbm [thread:$0]  %s1126_s21, 512, %s1772_s10, [#allocation4], %s1473_s23, %s1473_s23, %s1474_s24  }
 0x3cd   :  { %1470 = dma.done.wait [#allocation4], 512  }
 0x3ce   :  { %1471 = vsyncadd [#allocation4], 4294966784 }
 0x3cf   :  { %1135 = vsyncpa [#allocation3], 1 }
 0x3d0   :  { %1136 = vsyncpa [#allocation6], 1 }
 0x3d1   :  { %1137 = vsyncpa [#allocation4], 1 }

</bundles_post_ra>
